<compile_context>
chip_gen: v5e
topology: v5e:2x2
jax: 0.10.0
libtpu: 0.0.40
codegen_flags: <defaults>
</compile_context>

<pallas_src>
import functools

import jax
import jax.numpy as jnp
from jax.experimental import pallas as pl
from jax.experimental.pallas import tpu as pltpu

_LANES = 128


def _round_up(x, m):
    return ((x + m - 1) // m) * m


def _value_head_kernel(x_ref, w1_ref, b1_ref, w2_ref, b2_ref, w3_ref, b3_ref,
                       o_ref):
    # hidden_states.detach().to(torch.float32)  (detach == stop_gradient, done
    # in the wrapper; the fp32 cast happens here so the input can stream as
    # bf16 and the matmuls run with fp32 operands / fp32 accumulation).
    x = x_ref[...].astype(jnp.float32)

    # Linear -> (Dropout = Identity) -> ReLU
    h1 = jnp.dot(x, w1_ref[...], preferred_element_type=jnp.float32) + b1_ref[...]
    h1 = jnp.maximum(h1, 0.0)

    # Linear -> (Dropout = Identity) -> ReLU
    h2 = jnp.dot(h1, w2_ref[...], preferred_element_type=jnp.float32) + b2_ref[...]
    h2 = jnp.maximum(h2, 0.0)

    # Linear(H, 1), lane-dense: w3/b3 are zero-padded to 128 output lanes so the
    # store is a full unmasked (tm, 128) tile; column 0 holds the real value.
    o_ref[...] = (jnp.dot(h2, w3_ref[...], preferred_element_type=jnp.float32)
                  + b3_ref[...])


@functools.partial(jax.jit, static_argnames=("tm",))
def value_head_forward(hidden_states, params, *, tm=256):
    """ValueHead.forward.  hidden_states: (B, S, H) any float dtype.

    Returns the per-token value of shape (B, S, 1), float32 (matches PyTorch).
    """
    B, S, H = hidden_states.shape
    N = B * S

    # .detach()
    hidden_states = jax.lax.stop_gradient(hidden_states)
    x = hidden_states.reshape(N, H)

    # Token-tile size: multiple of 8 sublanes, capped by (padded) N.
    tm_eff = min(tm, _round_up(N, 8))
    n_pad = _round_up(N, tm_eff)
    if n_pad != N:
        x = jnp.pad(x, ((0, n_pad - N), (0, 0)))

    # Pad the (H, 1) final projection to 128 lanes (column 0 = real weights).
    w3p = jnp.zeros((H, _LANES), jnp.float32).at[:, 0].set(params["w3"][:, 0])
    b3p = jnp.zeros((1, _LANES), jnp.float32).at[:, 0].set(params["b3"][:, 0])

    grid = (n_pad // tm_eff,)

    # VMEM budget: resident weights + double-buffered x/out tiles + temporaries.
    itemsize = jnp.dtype(x.dtype).itemsize
    weight_bytes = 2 * H * H * 4 + H * _LANES * 4 + (2 * H + _LANES) * 4
    io_bytes = 2 * (tm_eff * H * itemsize) + 2 * (tm_eff * _LANES * 4)
    tmp_bytes = 4 * tm_eff * H * 4
    vmem_limit = int(min(max(weight_bytes + io_bytes + tmp_bytes + (8 << 20),
                             32 << 20), 64 << 20))

    flops = 2 * n_pad * H * (2 * H + _LANES)
    bytes_accessed = (n_pad * H * itemsize + weight_bytes
                      + n_pad * _LANES * 4)

    out = pl.pallas_call(
        _value_head_kernel,
        out_shape=jax.ShapeDtypeStruct((n_pad, _LANES), jnp.float32),
        grid_spec=pltpu.PrefetchScalarGridSpec(
            num_scalar_prefetch=0,
            grid=grid,
            in_specs=[
                pl.BlockSpec((tm_eff, H), lambda i: (i, 0)),   # x tile (streamed)
                pl.BlockSpec((H, H), lambda i: (0, 0)),        # w1 (resident)
                pl.BlockSpec((1, H), lambda i: (0, 0)),        # b1 (resident)
                pl.BlockSpec((H, H), lambda i: (0, 0)),        # w2 (resident)
                pl.BlockSpec((1, H), lambda i: (0, 0)),        # b2 (resident)
                pl.BlockSpec((H, _LANES), lambda i: (0, 0)),   # w3 padded (resident)
                pl.BlockSpec((1, _LANES), lambda i: (0, 0)),   # b3 padded (resident)
            ],
            out_specs=pl.BlockSpec((tm_eff, _LANES), lambda i: (i, 0)),
        ),
        compiler_params=pltpu.CompilerParams(
            dimension_semantics=("parallel",),
            vmem_limit_bytes=vmem_limit,
        ),
        cost_estimate=pl.CostEstimate(
            flops=flops, transcendentals=0, bytes_accessed=bytes_accessed),
    )(x, params["w1"], params["b1"], params["w2"], params["b2"], w3p, b3p)

    # Lane-dense slab -> (B, S, 1) scalar-per-token output (matches nn.Linear(H,1)).
    value = out[:N, 0].reshape(B, S, 1)
    return value


def make_params(key, hidden_size):
    """Value-head parameters in FP32 (PyTorch Linear W (out,in) stored as (in,out))."""
    H = hidden_size
    ks = jax.random.split(key, 6)
    scale = 1.0 / jnp.sqrt(H)
    return {
        "w1": jax.random.normal(ks[0], (H, H), jnp.float32) * scale,
        "b1": jax.random.uniform(ks[1], (1, H), jnp.float32, -scale, scale),
        "w2": jax.random.normal(ks[2], (H, H), jnp.float32) * scale,
        "b2": jax.random.uniform(ks[3], (1, H), jnp.float32, -scale, scale),
        "w3": jax.random.normal(ks[4], (H, 1), jnp.float32) * scale,
        "b3": jax.random.uniform(ks[5], (1, 1), jnp.float32, -scale, scale),
    }


def _reference(hidden_states, params):
    """Pure-JAX reference of ValueHead.forward (eval mode)."""
    x = hidden_states.astype(jnp.float32)
    hp = jax.lax.Precision.HIGHEST
    h1 = jnp.maximum(jnp.dot(x, params["w1"], precision=hp) + params["b1"], 0.0)
    h2 = jnp.maximum(jnp.dot(h1, params["w2"], precision=hp) + params["b2"], 0.0)
    return jnp.dot(h2, params["w3"], precision=hp) + params["b3"]


if __name__ == "__main__":
    B, S, H = 2, 8, 32
    key = jax.random.PRNGKey(0)
    k_par, k_hid = jax.random.split(key)

    params = make_params(k_par, H)
    # Backbone hidden states (e.g. bf16 from the causal LM); the head casts to fp32.
    hidden_states = jax.random.normal(k_hid, (B, S, H), jnp.bfloat16)

    value = value_head_forward(hidden_states, params)
    value = jax.block_until_ready(value)

    assert value.shape == (B, S, 1) and value.dtype == jnp.float32

    ref = _reference(hidden_states, params)
    assert jnp.allclose(value, ref, rtol=2e-2, atol=2e-2), (
        f"max abs err {jnp.max(jnp.abs(value - ref))}")

    print("KERNEL_OK")
</pallas_src>

<mosaic_0001>
module attributes {stable_mosaic.version = 11 : i64} {
  func.func @_value_head_kernel(%arg0: i32, %arg1: memref<16x32xbf16, #tpu.memory_space<vmem>>, %arg2: memref<32x32xf32, #tpu.memory_space<vmem>>, %arg3: memref<1x32xf32, #tpu.memory_space<vmem>>, %arg4: memref<32x32xf32, #tpu.memory_space<vmem>>, %arg5: memref<1x32xf32, #tpu.memory_space<vmem>>, %arg6: memref<32x128xf32, #tpu.memory_space<vmem>>, %arg7: memref<1x128xf32, #tpu.memory_space<vmem>>, %arg8: memref<16x128xf32, #tpu.memory_space<vmem>>) attributes {dimension_semantics = [#tpu.dimension_semantics<parallel>], iteration_bounds = array<i64: 1>, scalar_prefetch = 0 : i64, scratch_operands = 0 : i64, tpu.core_type = #tpu.core_type<tc>, window_params = [{transform_indices = @transform_0, window_bounds = array<i64: 16, 32>}, {pipeline_mode = #tpu.pipeline_mode<synchronous>, transform_indices = @transform_1, window_bounds = array<i64: 32, 32>}, {pipeline_mode = #tpu.pipeline_mode<synchronous>, transform_indices = @transform_2, window_bounds = array<i64: 1, 32>}, {pipeline_mode = #tpu.pipeline_mode<synchronous>, transform_indices = @transform_3, window_bounds = array<i64: 32, 32>}, {pipeline_mode = #tpu.pipeline_mode<synchronous>, transform_indices = @transform_4, window_bounds = array<i64: 1, 32>}, {pipeline_mode = #tpu.pipeline_mode<synchronous>, transform_indices = @transform_5, window_bounds = array<i64: 32, 128>}, {pipeline_mode = #tpu.pipeline_mode<synchronous>, transform_indices = @transform_6, window_bounds = array<i64: 1, 128>}, {transform_indices = @transform_7, window_bounds = array<i64: 16, 128>}]} {
    %c0 = arith.constant 0 : index
    %c0_0 = arith.constant 0 : index
    %0 = vector.load %arg1[%c0, %c0_0] : memref<16x32xbf16, #tpu.memory_space<vmem>>, vector<16x32xbf16>
    %1 = arith.extf %0 : vector<16x32xbf16> to vector<16x32xf32>
    %c0_1 = arith.constant 0 : index
    %c0_2 = arith.constant 0 : index
    %2 = vector.load %arg2[%c0_1, %c0_2] : memref<32x32xf32, #tpu.memory_space<vmem>>, vector<32x32xf32>
    %cst = arith.constant dense<0.000000e+00> : vector<16x32xf32>
    %3 = tpu.matmul %1, %2, %cst {dimension_numbers = #tpu.dot_dimension_numbers<[1], [0], [0], [1], [0, 0, 1, 1], [], []>} : vector<16x32xf32>, vector<32x32xf32>, vector<16x32xf32> -> vector<16x32xf32>
    %c0_3 = arith.constant 0 : index
    %c0_4 = arith.constant 0 : index
    %4 = vector.load %arg3[%c0_3, %c0_4] : memref<1x32xf32, #tpu.memory_space<vmem>>, vector<1x32xf32>
    %5 = vector.broadcast %4 : vector<1x32xf32> to vector<16x32xf32>
    %6 = arith.addf %3, %5 : vector<16x32xf32>
    %cst_5 = arith.constant 0.000000e+00 : f32
    %7 = vector.broadcast %cst_5 : f32 to vector<16x32xf32>
    %8 = arith.maximumf %6, %7 : vector<16x32xf32>
    %c0_6 = arith.constant 0 : index
    %c0_7 = arith.constant 0 : index
    %9 = vector.load %arg4[%c0_6, %c0_7] : memref<32x32xf32, #tpu.memory_space<vmem>>, vector<32x32xf32>
    %cst_8 = arith.constant dense<0.000000e+00> : vector<16x32xf32>
    %10 = tpu.matmul %8, %9, %cst_8 {dimension_numbers = #tpu.dot_dimension_numbers<[1], [0], [0], [1], [0, 0, 1, 1], [], []>} : vector<16x32xf32>, vector<32x32xf32>, vector<16x32xf32> -> vector<16x32xf32>
    %c0_9 = arith.constant 0 : index
    %c0_10 = arith.constant 0 : index
    %11 = vector.load %arg5[%c0_9, %c0_10] : memref<1x32xf32, #tpu.memory_space<vmem>>, vector<1x32xf32>
    %12 = vector.broadcast %11 : vector<1x32xf32> to vector<16x32xf32>
    %13 = arith.addf %10, %12 : vector<16x32xf32>
    %cst_11 = arith.constant 0.000000e+00 : f32
    %14 = vector.broadcast %cst_11 : f32 to vector<16x32xf32>
    %15 = arith.maximumf %13, %14 : vector<16x32xf32>
    %c0_12 = arith.constant 0 : index
    %c0_13 = arith.constant 0 : index
    %16 = vector.load %arg6[%c0_12, %c0_13] : memref<32x128xf32, #tpu.memory_space<vmem>>, vector<32x128xf32>
    %cst_14 = arith.constant dense<0.000000e+00> : vector<16x128xf32>
    %17 = tpu.matmul %15, %16, %cst_14 {dimension_numbers = #tpu.dot_dimension_numbers<[1], [0], [0], [1], [0, 0, 1, 1], [], []>} : vector<16x32xf32>, vector<32x128xf32>, vector<16x128xf32> -> vector<16x128xf32>
    %c0_15 = arith.constant 0 : index
    %c0_16 = arith.constant 0 : index
    %18 = vector.load %arg7[%c0_15, %c0_16] : memref<1x128xf32, #tpu.memory_space<vmem>>, vector<1x128xf32>
    %19 = vector.broadcast %18 : vector<1x128xf32> to vector<16x128xf32>
    %20 = arith.addf %17, %19 : vector<16x128xf32>
    %c0_17 = arith.constant 0 : index
    %c0_18 = arith.constant 0 : index
    %21 = vector.load %arg8[%c0_17, %c0_18] : memref<16x128xf32, #tpu.memory_space<vmem>>, vector<16x128xf32>
    tpu.vector_store %arg8[%c0_17, %c0_18], %20 {strides = array<i32>} : memref<16x128xf32, #tpu.memory_space<vmem>>, vector<16x128xf32>,
    return
  }
  func.func @transform_0(%arg0: i32) -> (i32, i32) {
    %c0_i32 = arith.constant 0 : i32
    %c0_i32_0 = arith.constant 0 : i32
    return %arg0, %c0_i32 : i32, i32
  }
  func.func @transform_1(%arg0: i32) -> (i32, i32) {
    %c0_i32 = arith.constant 0 : i32
    %c0_i32_0 = arith.constant 0 : i32
    %c0_i32_1 = arith.constant 0 : i32
    return %c0_i32, %c0_i32_0 : i32, i32
  }
  func.func @transform_2(%arg0: i32) -> (i32, i32) {
    %c0_i32 = arith.constant 0 : i32
    %c0_i32_0 = arith.constant 0 : i32
    %c0_i32_1 = arith.constant 0 : i32
    return %c0_i32, %c0_i32_0 : i32, i32
  }
  func.func @transform_3(%arg0: i32) -> (i32, i32) {
    %c0_i32 = arith.constant 0 : i32
    %c0_i32_0 = arith.constant 0 : i32
    %c0_i32_1 = arith.constant 0 : i32
    return %c0_i32, %c0_i32_0 : i32, i32
  }
  func.func @transform_4(%arg0: i32) -> (i32, i32) {
    %c0_i32 = arith.constant 0 : i32
    %c0_i32_0 = arith.constant 0 : i32
    %c0_i32_1 = arith.constant 0 : i32
    return %c0_i32, %c0_i32_0 : i32, i32
  }
  func.func @transform_5(%arg0: i32) -> (i32, i32) {
    %c0_i32 = arith.constant 0 : i32
    %c0_i32_0 = arith.constant 0 : i32
    %c0_i32_1 = arith.constant 0 : i32
    return %c0_i32, %c0_i32_0 : i32, i32
  }
  func.func @transform_6(%arg0: i32) -> (i32, i32) {
    %c0_i32 = arith.constant 0 : i32
    %c0_i32_0 = arith.constant 0 : i32
    %c0_i32_1 = arith.constant 0 : i32
    return %c0_i32, %c0_i32_0 : i32, i32
  }
  func.func @transform_7(%arg0: i32) -> (i32, i32) {
    %c0_i32 = arith.constant 0 : i32
    %c0_i32_0 = arith.constant 0 : i32
    return %arg0, %c0_i32 : i32, i32
  }
}

</mosaic_0001>

<bundles_post_ra>
// kernel: squeeze.5
= control target key start
LH: loop header
LB: loop body
LE: loop exit
PB: predicated region body
PF: predicated region fallthrough
CT: control target
= control target key end

     0   :  { %s80_s0 = inlined_call_operand.vmem [shape: f32[16], index: 0, kind: input, shape index: {}]   ;;  %s81_s1 = inlined_call_operand.hbm [shape: f32[2,8,1], index: 1, kind: output, shape index: {}]  }
   0x1   :  { %v5_v0 = vld [vmem:[%s80_s0] sm:$0x1] }
   0x2   :  { %2 = vsyncpa [#allocation1], 0  ;;  %6 = vst [vmem:[#allocation3] sm:$0x1] %v5_v0  ;;  %vm8_vm0 = vcmask 64512   ;;  %s62_s0 = smov 120  }
   0x3   :  { %s63_s8 = smov [#allocation0]   ;;  %s27_s1 = sshll.u32 %s81_s1, 4  ;;  %s28_s1 = int_to_ptr.hbm [resolvable:$true] %s27_s1 }
   0x4   :  { %s25_s9 = sshll.u32 %s63_s8, 4  ;;  %s26_s9 = int_to_ptr.vmem [resolvable:$true] %s25_s9 }
   0x9   :  { %v10_v1 = vld [vmem:[#allocation3] sm:$0x1]  }
   0xa   :  { %v7_v2 = vld [vmem:[#allocation3] sm:$0x1]   ;;  %11 = vrot.lane.b32.xlu0 %v10_v1, %s62_s0 }
   0xb   :  { %9 = vst.msk [vmem:[#allocation2] sm:$0x1] %vm8_vm0, %v7_v2  }
  0x7c   :  { %v12_v3 = vpop.permute.xlu0 %11  }
  0x7d   :  { %15 = vst.msk [vmem:[#allocation2 + $0x1] sm:$0x1] %vm8_vm0, %v12_v3  }
  0x84   :  { %v18_v4 = vld [vmem:[#allocation2] sm:$0x3] }
  0x85   :  { %21 = vst [vmem:[#allocation0] sm:$0x3] %v18_v4 }
  0x86   :  { %30 = dma.vmem_to_hbm [thread:$0]  %s26_s9, 32, %s28_s1, [#allocation1]  }
  0x87   :  { %60 = dma.done.wait [#allocation1], 32  }
  0x88   :  { %61 = vsyncadd [#allocation1], 4294967264 }
  0x89   :  { %33 = vsyncpa [#allocation1], 1 }

// kernel: value_head_forward.1
= control target key start
LH: loop header
LB: loop body
LE: loop exit
PB: predicated region body
PF: predicated region fallthrough
CT: control target
= control target key end

     0   :  { %vm38_vm0 = vcmask 261120   ;;  %s269_s1 = inlined_call_operand.vmem [shape: f32[32,32], index: 1, kind: input, shape index: {}]   ;;  %s270_s0 = inlined_call_operand.vmem [shape: bf16[16,32], index: 0, kind: input, shape index: {}]   ;;  %s271_s3 = inlined_call_operand.vmem [shape: f32[32,32], index: 3, kind: input, shape index: {}]   ;;  %s272_s2 = inlined_call_operand.vmem [shape: f32[1,32], index: 2, kind: input, shape index: {}]   ;;  %s273_s4 = inlined_call_operand.vmem [shape: f32[1,32], index: 4, kind: input, shape index: {}]   ;;  %s274_s5 = inlined_call_operand.vmem [shape: f32[32,128], index: 5, kind: input, shape index: {}]   ;;  %s275_s6 = inlined_call_operand.vmem [shape: f32[1,128], index: 6, kind: input, shape index: {}]   ;;  %s276_s7 = inlined_call_operand.vmem [shape: f32[16,128], index: 7, kind: output, shape index: {}]  }
   0x1   :  { %v33_v0 = vld [vmem:[%s269_s1 + $0x18] sm:$0xff]  ;;  %v32_v1 = vld [vmem:[%s269_s1 + $0x10] sm:$0xff]  ;;  %v159_v2 = vld [vmem:[%s270_s0] sm:$0xff]  }
   0x2   :  { %57 = vmatpush.msra.mxu0 %v33_v0  ;;  %162 = vmatpush.msra.mxu3 %v33_v0  ;;  %v73_v3 = vld [vmem:[%s271_s3 + $0x18] sm:$0xff]  ;;  %v31_v4 = vld [vmem:[%s269_s1 + $0x8] sm:$0xff]  ;;  %v30_v5 = vld [vmem:[%s269_s1] sm:$0xff]  ;;  %v160_v6 = vunpack.c.l.bf16 %v159_v2  ;;  %v161_v7 = vunpack.c.h.bf16 %v159_v2 }
   0x3   :  { %96 = vmatpush.msra.mxu1 %v73_v3  ;;  %v72_v8 = vld [vmem:[%s271_s3 + $0x10] sm:$0xff]  ;;  %v71_v9 = vld [vmem:[%s271_s3 + $0x8] sm:$0xff]  ;;  %v70_v10 = vld [vmem:[%s271_s3] sm:$0xff] }
   0x4   :  { %58 = vmatpush.msra.mxu0 %v32_v1  ;;  %163 = vmatpush.msra.mxu3 %v32_v1  ;;  %v112_v11 = vld [vmem:[%s274_s5 + $0x18] sm:$0xff]  ;;  %v166_v12 = vld [vmem:[%s272_s2] ss:$0 sm:$0xff]  ;;  %v111_v19 = vld [vmem:[%s274_s5 + $0x10] sm:$0xff] }
   0x5   :  { %97 = vmatpush.msra.mxu1 %v72_v8  ;;  %135 = vmatpush.msra.mxu2 %v112_v11  ;;  %v110_v20 = vld [vmem:[%s274_s5 + $0x8] sm:$0xff]  ;;  %v109_v21 = vld [vmem:[%s274_s5] sm:$0xff] }
   0x6   :  { %59 = vmatpush.msra.mxu0 %v31_v4  ;;  %164 = vmatpush.msra.mxu3 %v31_v4  ;;  %v167_v22 = vld [vmem:[%s273_s4] ss:$0 sm:$0xff] }
   0x7   :  { %98 = vmatpush.msra.mxu1 %v71_v9  ;;  %136 = vmatpush.msra.mxu2 %v111_v19  ;;  %v168_v29 = vld [vmem:[%s275_s6] ss:$0 sm:$0xff] }
   0x8   :  { %60 = vmatpush.msra.mxu0 %v30_v5  ;;  %165 = vmatpush.msra.mxu3 %v30_v5 }
   0x9   :  { %152 = vmatmul.msk.f32.vlgmr.msra.gmra.mxu0 %vm38_vm0, %v160_v6  ;;  %153 = vmatmul.msk.f32.vlgmr.msra.gmra.mxu3 %vm38_vm0, %v161_v7 }
   0xa   :  { %99 = vmatpush.msra.mxu1 %v70_v10  ;;  %137 = vmatpush.msra.mxu2 %v110_v20 }
   0xc   :  { %138 = vmatpush.msra.mxu2 %v109_v21 }
  0x86   :  { %v62_v13 = vpop.f32.mrf.mxu0 }
  0x87   :  { %v63_v14 = vadd.f32 %v166_v12, %v62_v13 }
  0x89   :  { %v68_v15 = vmax.f32 %v63_v14, 0.0 }
  0x8b   :  { %154 = vmatmul.msk.f32.vlgmr.msra.gmra.mxu1 %vm38_vm0, %v68_v15 }
  0x8c   :  { %v65_v16 = vpop.f32.mrf.mxu3 }
  0x8d   :  { %v66_v17 = vadd.f32 %v166_v12, %v65_v16 }
  0x8f   :  { %v69_v18 = vmax.f32 %v66_v17, 0.0 }
  0x93   :  { %155 = vmatmul.msk.f32.gmra.mxu1 %vm38_vm0, %v69_v18 }
 0x108   :  { %v101_v23 = vpop.f32.mrf.mxu1 }
 0x109   :  { %v102_v24 = vadd.f32 %v167_v22, %v101_v23 }
 0x10b   :  { %v107_v25 = vmax.f32 %v102_v24, 0.0 }
 0x10d   :  { %156 = vmatmul.msk.f32.vlgmr.msra.gmra.mxu2 %vm38_vm0, %v107_v25 }
 0x110   :  { %v104_v26 = vpop.f32.mrf.mxu1 }
 0x111   :  { %v105_v27 = vadd.f32 %v167_v22, %v104_v26 }
 0x113   :  { %v108_v28 = vmax.f32 %v105_v27, 0.0 }
 0x115   :  { %157 = vmatmul.msk.f32.gmra.mxu2 %vm38_vm0, %v108_v28 }
 0x190   :  { %v140_v30 = vpop.f32.mrf.mxu2 }
 0x191   :  { %v141_v31 = vadd.f32 %v168_v29, %v140_v30 }
 0x193   :  { %146 = vst [vmem:[%s276_s7] sm:$0xff] %v141_v31 }
 0x198   :  { %v143_v32 = vpop.f32.mrf.mxu2 }
 0x199   :  { %v144_v33 = vadd.f32 %v168_v29, %v143_v32 }
 0x19b   :  { %147 = vst [vmem:[%s276_s7 + $0x8] sm:$0xff] %v144_v33 }

</bundles_post_ra>
